<compile_context>
chip_gen: v5e
topology: v5e:2x2
jax: 0.10.0
libtpu: 0.0.40
codegen_flags: <defaults>
</compile_context>

<pallas_src>
import functools

import jax
import jax.numpy as jnp
from jax.experimental import pallas as pl
from jax.experimental.pallas import tpu as pltpu

SMOOTH = 1.0
_LANES = 128
_SUBLANES = 8


def _dice_kernel(p_ref, t_ref, inter_ref, denom_ref, acc_i, acc_d,
                 *, tr, r0, nb_in, needs_mask):
    """Accumulates global intersection / (sum(pred)+sum(true)) partials.

    Grid = (NP, N, NB_in): outer parallel split of the channel-0 row-blocks,
    then batch, then inner row-blocks (both "arbitrary", accumulating into the
    resident (8,128) VMEM accumulators).  Outputs are one lane-dense (8,128)
    partial block per outer index, written once at the last inner step.
    """
    g = pl.program_id(0)
    n = pl.program_id(1)
    b = pl.program_id(2)

    @pl.when(jnp.logical_and(n == 0, b == 0))
    def _():
        acc_i[...] = jnp.zeros_like(acc_i)
        acc_d[...] = jnp.zeros_like(acc_d)

    p = p_ref[...].astype(jnp.float32)          # (tr, 128)
    t = t_ref[...].astype(jnp.float32)

    if needs_mask:
        # Logical (unclamped) row-block index -> global row index; rows >= r0
        # belong to channels >= 1 (or to DMA edge padding) and are zeroed
        # before they enter the products/sums.
        j = g * nb_in + b
        row = jax.lax.broadcasted_iota(jnp.int32, (tr, _LANES), 0) + j * tr
        valid = row < r0
        p = jnp.where(valid, p, 0.0)
        t = jnp.where(valid, t, 0.0)

    # Vreg-aligned partial reduction: (tr,128) -> (tr//8, 8, 128) is a pure
    # regrouping of (8,128) tiles, so the sum is plain VPU vreg adds.
    acc_i[...] += (p * t).reshape(tr // _SUBLANES, _SUBLANES, _LANES).sum(axis=0)
    acc_d[...] += (p + t).reshape(tr // _SUBLANES, _SUBLANES, _LANES).sum(axis=0)

    @pl.when(jnp.logical_and(n == pl.num_programs(1) - 1,
                             b == pl.num_programs(2) - 1))
    def _():
        inter_ref[...] = acc_i[...]
        denom_ref[...] = acc_d[...]


def _block_rows(r_total, r0, itemsize):
    """Rows (of 128 lanes) per input block, a multiple of 8 sized for ~4 MiB
    blocks, budgeted against the actual chip VMEM (v7x: 64 MiB per TC)."""
    try:
        vmem_cap = pltpu.get_tpu_info().vmem_capacity_bytes
    except Exception:  # be robust if the introspection API is unavailable
        vmem_cap = 64 << 20
    # 2 inputs x 2 pipeline buffers of one block must stay well under budget.
    target_block_bytes = min(4 << 20, vmem_cap // 16)
    tr_cap = max(_SUBLANES,
                 (target_block_bytes // (_LANES * itemsize))
                 // _SUBLANES * _SUBLANES)
    tr = min(tr_cap,
             (r_total // _SUBLANES) * _SUBLANES,
             ((r0 + _SUBLANES - 1) // _SUBLANES) * _SUBLANES)
    return max(_SUBLANES, tr)


@jax.jit
def dice_loss(y_pred, y_true):
    assert y_pred.shape == y_true.shape
    N, C, H, W = y_pred.shape
    hw = H * W
    chw = C * hw
    r0 = hw // _LANES            # full 128-lane rows that are purely channel 0
    tail = hw % _LANES           # trailing channel-0 pixels (handled in JAX)

    use_kernel = (chw % _LANES == 0) and (chw // _LANES >= _SUBLANES) and r0 >= 1
    if not use_kernel:
        # Degenerate / tiny spatial shapes: a Pallas launch is pure overhead,
        # compute the handful of elements in plain JAX instead.
        yp = y_pred[:, 0].reshape(-1).astype(jnp.float32)
        yt = y_true[:, 0].reshape(-1).astype(jnp.float32)
        inter = jnp.sum(yp * yt)
        denom = jnp.sum(yp) + jnp.sum(yt)
        return 1.0 - (2.0 * inter + SMOOTH) / (denom + SMOOTH)

    r_total = chw // _LANES
    # Free, contiguous reshape to a lane-dense layout.
    yp3 = y_pred.reshape(N, r_total, _LANES)
    yt3 = y_true.reshape(N, r_total, _LANES)

    itemsize = y_pred.dtype.itemsize
    tr = _block_rows(r_total, r0, itemsize)
    nbt = -(-r0 // tr)                        # row-blocks covering channel 0
    npar = 2 if nbt >= 2 else 1               # outer split -> both v7x TCs busy
    nb_in = -(-nbt // npar)
    needs_mask = (npar * nb_in * tr) != r0
    clamp = (npar * nb_in) > nbt              # cdiv rounding -> clamp block idx

    def in_map(g, n, b):
        j = g * nb_in + b
        if clamp:
            j = jnp.minimum(j, nbt - 1)       # duplicate block; mask zeroes it
        return (n, j, 0)

    in_spec = pl.BlockSpec((pl.Squeezed(), tr, _LANES), in_map)
    out_spec = pl.BlockSpec((pl.Squeezed(), _SUBLANES, _LANES),
                            lambda g, n, b: (g, 0, 0))

    block_bytes = tr * _LANES * itemsize
    vmem_limit = int(min(48 << 20, max(16 << 20, 6 * block_bytes)))

    kernel = functools.partial(_dice_kernel, tr=tr, r0=r0, nb_in=nb_in,
                               needs_mask=needs_mask)

    inter_p, denom_p = pl.pallas_call(
        kernel,
        out_shape=(
            jax.ShapeDtypeStruct((npar, _SUBLANES, _LANES), jnp.float32),
            jax.ShapeDtypeStruct((npar, _SUBLANES, _LANES), jnp.float32),
        ),
        grid_spec=pltpu.PrefetchScalarGridSpec(
            num_scalar_prefetch=0,
            grid=(npar, N, nb_in),
            in_specs=[in_spec, in_spec],
            out_specs=[out_spec, out_spec],
            scratch_shapes=[
                pltpu.VMEM((_SUBLANES, _LANES), jnp.float32),  # intersection
                pltpu.VMEM((_SUBLANES, _LANES), jnp.float32),  # sum(p)+sum(t)
            ],
        ),
        compiler_params=pltpu.CompilerParams(
            dimension_semantics=("parallel", "arbitrary", "arbitrary"),
            vmem_limit_bytes=vmem_limit,
        ),
        cost_estimate=pl.CostEstimate(
            flops=3 * N * npar * nb_in * tr * _LANES,
            transcendentals=0,
            bytes_accessed=(2 * N * npar * nb_in * tr * _LANES * itemsize
                            + 2 * npar * _SUBLANES * _LANES * 4),
        ),
    )(yp3, yt3)

    inter = jnp.sum(inter_p)
    denom = jnp.sum(denom_p)

    if tail:
        # Trailing sub-128-lane channel-0 pixels of each batch (tiny).
        p_t = yp3[:, r0, :tail].astype(jnp.float32)
        t_t = yt3[:, r0, :tail].astype(jnp.float32)
        inter = inter + jnp.sum(p_t * t_t)
        denom = denom + jnp.sum(p_t) + jnp.sum(t_t)

    dsc = (2.0 * inter + SMOOTH) / (denom + SMOOTH)
    return 1.0 - dsc


def dice_loss_ref(y_pred, y_true):
    """Pure-JAX reference matching the PyTorch DiceLoss.forward exactly."""
    yp = y_pred[:, 0].reshape(-1)
    yt = y_true[:, 0].reshape(-1)
    inter = jnp.sum(yp * yt)
    dsc = (2.0 * inter + SMOOTH) / (jnp.sum(yp) + jnp.sum(yt) + SMOOTH)
    return 1.0 - dsc


if __name__ == "__main__":
    key = jax.random.PRNGKey(0)
    k1, k2 = jax.random.split(key)
    # NCHW, like the PyTorch module would receive from a UNet head.
    shape = (2, 4, 16, 16)
    y_pred = jax.nn.sigmoid(jax.random.normal(k1, shape, dtype=jnp.float32))
    y_true = (jax.random.uniform(k2, shape) > 0.5).astype(jnp.float32)

    out = jax.block_until_ready(dice_loss(y_pred, y_true))
    ref = dice_loss_ref(y_pred, y_true)
    assert jnp.allclose(out, ref, atol=1e-5, rtol=1e-5), (out, ref)
    print("KERNEL_OK")
</pallas_src>

<mosaic_0001>
module attributes {stable_mosaic.version = 11 : i64} {
  func.func @_dice_kernel(%arg0: i32, %arg1: i32, %arg2: i32, %arg3: memref<1x8x128xf32, #tpu.memory_space<vmem>>, %arg4: memref<1x8x128xf32, #tpu.memory_space<vmem>>, %arg5: memref<1x8x128xf32, #tpu.memory_space<vmem>>, %arg6: memref<1x8x128xf32, #tpu.memory_space<vmem>>, %arg7: memref<8x128xf32, #tpu.memory_space<vmem>>, %arg8: memref<8x128xf32, #tpu.memory_space<vmem>>) attributes {dimension_semantics = [#tpu.dimension_semantics<parallel>, #tpu.dimension_semantics<arbitrary>, #tpu.dimension_semantics<arbitrary>], iteration_bounds = array<i64: 1, 2, 1>, scalar_prefetch = 0 : i64, scratch_operands = 2 : i64, tpu.core_type = #tpu.core_type<tc>, window_params = [{transform_indices = @transform_0, window_bounds = array<i64: 1, 8, 128>}, {transform_indices = @transform_1, window_bounds = array<i64: 1, 8, 128>}, {transform_indices = @transform_2, window_bounds = array<i64: 1, 8, 128>}, {transform_indices = @transform_3, window_bounds = array<i64: 1, 8, 128>}]} {
    %c0_i32 = arith.constant 0 : i32
    %0 = arith.cmpi eq, %arg1, %c0_i32 : i32
    %c0_i32_0 = arith.constant 0 : i32
    %1 = arith.cmpi eq, %arg2, %c0_i32_0 : i32
    %2 = arith.andi %0, %1 : i1
    %3 = arith.extui %2 : i1 to i32
    %c0_i32_1 = arith.constant 0 : i32
    %4 = arith.cmpi ne, %3, %c0_i32_1 : i32
    scf.if %4 {
      %cst_21 = arith.constant 0.000000e+00 : f32
      %38 = vector.broadcast %cst_21 : f32 to vector<8x128xf32>
      %c0_22 = arith.constant 0 : index
      %c0_23 = arith.constant 0 : index
      %39 = vector.load %arg7[%c0_22, %c0_23] : memref<8x128xf32, #tpu.memory_space<vmem>>, vector<8x128xf32>
      tpu.vector_store %arg7[%c0_22, %c0_23], %38 {strides = array<i32>} : memref<8x128xf32, #tpu.memory_space<vmem>>, vector<8x128xf32>,
      %cst_24 = arith.constant 0.000000e+00 : f32
      %40 = vector.broadcast %cst_24 : f32 to vector<8x128xf32>
      %c0_25 = arith.constant 0 : index
      %c0_26 = arith.constant 0 : index
      %41 = vector.load %arg8[%c0_25, %c0_26] : memref<8x128xf32, #tpu.memory_space<vmem>>, vector<8x128xf32>
      tpu.vector_store %arg8[%c0_25, %c0_26], %40 {strides = array<i32>} : memref<8x128xf32, #tpu.memory_space<vmem>>, vector<8x128xf32>,
    } else {
    }
    %c0 = arith.constant 0 : index
    %c0_2 = arith.constant 0 : index
    %c0_3 = arith.constant 0 : index
    %5 = vector.load %arg3[%c0, %c0_2, %c0_3] : memref<1x8x128xf32, #tpu.memory_space<vmem>>, vector<1x8x128xf32>
    %6 = vector.shape_cast %5 : vector<1x8x128xf32> to vector<8x128xf32>
    %c0_4 = arith.constant 0 : index
    %c0_5 = arith.constant 0 : index
    %c0_6 = arith.constant 0 : index
    %7 = vector.load %arg4[%c0_4, %c0_5, %c0_6] : memref<1x8x128xf32, #tpu.memory_space<vmem>>, vector<1x8x128xf32>
    %8 = vector.shape_cast %7 : vector<1x8x128xf32> to vector<8x128xf32>
    %c1_i32 = arith.constant 1 : i32
    %9 = arith.muli %arg0, %c1_i32 : i32
    %10 = arith.addi %9, %arg2 : i32
    %11 = tpu.iota {dimensions = array<i32: 0>} : vector<8x128xi32>
    %c8_i32 = arith.constant 8 : i32
    %12 = arith.muli %10, %c8_i32 : i32
    %13 = vector.broadcast %12 : i32 to vector<8x128xi32>
    %14 = arith.addi %11, %13 : vector<8x128xi32>
    %c2_i32 = arith.constant 2 : i32
    %15 = vector.broadcast %c2_i32 : i32 to vector<8x128xi32>
    %16 = arith.cmpi slt, %14, %15 : vector<8x128xi32>
    %cst = arith.constant 0.000000e+00 : f32
    %17 = vector.broadcast %cst : f32 to vector<8x128xf32>
    %18 = arith.select %16, %6, %17 : vector<8x128xi1>, vector<8x128xf32>
    %cst_7 = arith.constant 0.000000e+00 : f32
    %19 = vector.broadcast %cst_7 : f32 to vector<8x128xf32>
    %20 = arith.select %16, %8, %19 : vector<8x128xi1>, vector<8x128xf32>
    %c0_8 = arith.constant 0 : index
    %c0_9 = arith.constant 0 : index
    %21 = vector.load %arg7[%c0_8, %c0_9] : memref<8x128xf32, #tpu.memory_space<vmem>>, vector<8x128xf32>
    %22 = arith.mulf %18, %20 : vector<8x128xf32>
    %23 = vector.shape_cast %22 : vector<8x128xf32> to vector<1x8x128xf32>
    %cst_10 = arith.constant dense<0.000000e+00> : vector<8x128xf32>
    %24 = vector.multi_reduction <add>, %23, %cst_10 [0] : vector<1x8x128xf32> to vector<8x128xf32>
    %25 = arith.addf %21, %24 : vector<8x128xf32>
    %c0_11 = arith.constant 0 : index
    %c0_12 = arith.constant 0 : index
    %26 = vector.load %arg7[%c0_11, %c0_12] : memref<8x128xf32, #tpu.memory_space<vmem>>, vector<8x128xf32>
    tpu.vector_store %arg7[%c0_11, %c0_12], %25 {strides = array<i32>} : memref<8x128xf32, #tpu.memory_space<vmem>>, vector<8x128xf32>,
    %c0_13 = arith.constant 0 : index
    %c0_14 = arith.constant 0 : index
    %27 = vector.load %arg8[%c0_13, %c0_14] : memref<8x128xf32, #tpu.memory_space<vmem>>, vector<8x128xf32>
    %28 = arith.addf %18, %20 : vector<8x128xf32>
    %29 = vector.shape_cast %28 : vector<8x128xf32> to vector<1x8x128xf32>
    %cst_15 = arith.constant dense<0.000000e+00> : vector<8x128xf32>
    %30 = vector.multi_reduction <add>, %29, %cst_15 [0] : vector<1x8x128xf32> to vector<8x128xf32>
    %31 = arith.addf %27, %30 : vector<8x128xf32>
    %c0_16 = arith.constant 0 : index
    %c0_17 = arith.constant 0 : index
    %32 = vector.load %arg8[%c0_16, %c0_17] : memref<8x128xf32, #tpu.memory_space<vmem>>, vector<8x128xf32>
    tpu.vector_store %arg8[%c0_16, %c0_17], %31 {strides = array<i32>} : memref<8x128xf32, #tpu.memory_space<vmem>>, vector<8x128xf32>,
    %c1_i32_18 = arith.constant 1 : i32
    %33 = arith.cmpi eq, %arg1, %c1_i32_18 : i32
    %c0_i32_19 = arith.constant 0 : i32
    %34 = arith.cmpi eq, %arg2, %c0_i32_19 : i32
    %35 = arith.andi %33, %34 : i1
    %36 = arith.extui %35 : i1 to i32
    %c0_i32_20 = arith.constant 0 : i32
    %37 = arith.cmpi ne, %36, %c0_i32_20 : i32
    scf.if %37 {
      %c0_21 = arith.constant 0 : index
      %c0_22 = arith.constant 0 : index
      %38 = vector.load %arg7[%c0_21, %c0_22] : memref<8x128xf32, #tpu.memory_space<vmem>>, vector<8x128xf32>
      %c0_23 = arith.constant 0 : index
      %c0_24 = arith.constant 0 : index
      %c0_25 = arith.constant 0 : index
      %39 = vector.load %arg5[%c0_23, %c0_24, %c0_25] : memref<1x8x128xf32, #tpu.memory_space<vmem>>, vector<1x8x128xf32>
      %40 = vector.shape_cast %39 : vector<1x8x128xf32> to vector<8x128xf32>
      %41 = vector.shape_cast %38 : vector<8x128xf32> to vector<1x8x128xf32>
      tpu.vector_store %arg5[%c0_23, %c0_24, %c0_25], %41 {strides = array<i32>} : memref<1x8x128xf32, #tpu.memory_space<vmem>>, vector<1x8x128xf32>,
      %c0_26 = arith.constant 0 : index
      %c0_27 = arith.constant 0 : index
      %42 = vector.load %arg8[%c0_26, %c0_27] : memref<8x128xf32, #tpu.memory_space<vmem>>, vector<8x128xf32>
      %c0_28 = arith.constant 0 : index
      %c0_29 = arith.constant 0 : index
      %c0_30 = arith.constant 0 : index
      %43 = vector.load %arg6[%c0_28, %c0_29, %c0_30] : memref<1x8x128xf32, #tpu.memory_space<vmem>>, vector<1x8x128xf32>
      %44 = vector.shape_cast %43 : vector<1x8x128xf32> to vector<8x128xf32>
      %45 = vector.shape_cast %42 : vector<8x128xf32> to vector<1x8x128xf32>
      tpu.vector_store %arg6[%c0_28, %c0_29, %c0_30], %45 {strides = array<i32>} : memref<1x8x128xf32, #tpu.memory_space<vmem>>, vector<1x8x128xf32>,
    } else {
    }
    return
  }
  func.func @transform_0(%arg0: i32, %arg1: i32, %arg2: i32) -> (i32, i32, i32) {
    %c1_i32 = arith.constant 1 : i32
    %0 = arith.muli %arg0, %c1_i32 : i32
    %1 = arith.addi %0, %arg2 : i32
    %c0_i32 = arith.constant 0 : i32
    %c0_i32_0 = arith.constant 0 : i32
    return %arg1, %1, %c0_i32 : i32, i32, i32
  }
  func.func @transform_1(%arg0: i32, %arg1: i32, %arg2: i32) -> (i32, i32, i32) {
    %c1_i32 = arith.constant 1 : i32
    %0 = arith.muli %arg0, %c1_i32 : i32
    %1 = arith.addi %0, %arg2 : i32
    %c0_i32 = arith.constant 0 : i32
    %c0_i32_0 = arith.constant 0 : i32
    return %arg1, %1, %c0_i32 : i32, i32, i32
  }
  func.func @transform_2(%arg0: i32, %arg1: i32, %arg2: i32) -> (i32, i32, i32) {
    %c0_i32 = arith.constant 0 : i32
    %c0_i32_0 = arith.constant 0 : i32
    %c0_i32_1 = arith.constant 0 : i32
    return %arg0, %c0_i32, %c0_i32_0 : i32, i32, i32
  }
  func.func @transform_3(%arg0: i32, %arg1: i32, %arg2: i32) -> (i32, i32, i32) {
    %c0_i32 = arith.constant 0 : i32
    %c0_i32_0 = arith.constant 0 : i32
    %c0_i32_1 = arith.constant 0 : i32
    return %arg0, %c0_i32, %c0_i32_0 : i32, i32, i32
  }
}

</mosaic_0001>

<bundles_post_ra>
// kernel: dice_loss.1
= control target key start
LH: loop header
LB: loop body
LE: loop exit
PB: predicated region body
PF: predicated region fallthrough
CT: control target
= control target key end

     0   :  { %s479_s12 = smov 0   ;;  %s481_s13 = smov 0   ;;  %s526_s0 = inlined_call_operand.vmem [shape: f32[2,8,128], index: 0, kind: input, shape index: {}]   ;;  %s527_s1 = inlined_call_operand.vmem [shape: f32[2,8,128], index: 1, kind: input, shape index: {}]   ;;  %s528_s2 = inlined_call_operand.vmem [shape: f32[1,8,128], index: 2, kind: output, shape index: {0}]   ;;  %s529_s3 = inlined_call_operand.vmem [shape: f32[1,8,128], index: 3, kind: output, shape index: {1}]  }
   0x1   :  { %s483_s14 = smov 0  }
   0x2 LB: > { %s29_s15 = sadd.s32 1, %s452_s13  ;;  %p398_p0 = scmp.ge.s32.totalorder %s456_s14, 1  ;;  %s456_s14 = sphi %s483_s14, %s14_s14   ;;  %s452_s13 = sphi %s481_s13, %s531_s13   ;;  %s448_s12 = sphi %s479_s12, %s530_s12  }
   0x3   : > { %p31_p1 = scmp.ge.s32.totalorder %s29_s15, 2  ;;  %p185_p2 = scmp.lt.s32.totalorder %s456_s14, 3 }
   0x5   : > { %s533_s15 = smov (%p31_p1, %s29_s15), 0  ;;  %p186_p3 = pnand %p398_p0, %p185_p2 }
   0x6   : > { %p224_p4 = scmp.lt.s32.totalorder (!%p186_p3), %s448_s12, 1  ;;  %p249_p5 = scmp.eq.s32.totalorder (!%p186_p3), %s448_s12, 0 }
   0x7   : > { %189 = sbr.rel (%p186_p3) target bundleno = 38 (0x26), region = 28 }
   0xc   : > { %s225_s16 = scalar_select %p224_p4, %s448_s12, 1  ;;  %v458_v0 = vmov (%p249_p5), 0.0  }
   0xd   : > { %254 = sbr.rel (!%p249_p5) target bundleno = 18 (0x12), region = 32  ;;  %255 = vst [vmem:[#allocation2] sm:$0xff] (%p249_p5), %v458_v0 }
   0xe   : > { %s399_s17 = sshll.u32 %s225_s16, 3  ;;  %256 = vst [vmem:[#allocation3] sm:$0xff] (%p249_p5), %v458_v0 }
   0xf   : > { %s230_s20 = scalar_lea.vmem %s526_s0, %s399_s17  ;;  %s239_s23 = scalar_lea.vmem %s527_s1, %s399_s17 }
  0x12 PF: > { %v260_v1 = vlaneseq  ;;  %p278_p6 = scmp.eq.s32.totalorder %s448_s12, 1  ;;  %v257_v2 = vld [vmem:[%s230_s20] sm:$0xff] }
  0x13   : > { %v258_v3 = vld [vmem:[%s239_s23] sm:$0xff] }
  0x14   : > { %v261_v4 = vshrl.u32 %v260_v1, 7  ;;  %v268_v7 = vld [vmem:[#allocation2] sm:$0xff] }
  0x15   : > { %v273_v8 = vld [vmem:[#allocation3] sm:$0xff] }
  0x16   : > { %vm265_vm0 = vcmp.lt.s32.totalorder %v261_v4, 2 }
  0x17   : > { %v266_v5 = vsel %vm265_vm0, %v257_v2, 0.0  ;;  %v267_v6 = vsel %vm265_vm0, %v258_v3, 0.0 }
  0x18   : > { %v269_v9 = vmul.f32 %v267_v6, %v266_v5  ;;  %v274_v10 = vadd.f32 %v267_v6, %v266_v5 }
  0x19   : > { %282 = sbr.rel (!%p278_p6) target bundleno = 38 (0x26), region = 36 }
  0x1a   : > { %v271_v11 = vadd.f32 %v269_v9, %v268_v7  ;;  %v276_v12 = vadd.f32 %v274_v10, %v273_v8 }
  0x1c   : > { %272 = vst [vmem:[#allocation2] sm:$0xff] %v271_v11 }
  0x1d   : > { %277 = vst [vmem:[#allocation3] sm:$0xff] %v276_v12 }
  0x23   : > { %v283_v13 = vld [vmem:[#allocation2] sm:$0xff] }
  0x24   : > { %v285_v14 = vld [vmem:[#allocation3] sm:$0xff]  ;;  %284 = vst [vmem:[%s528_s2] sm:$0xff] %v283_v13 }
  0x25   : > { %286 = vst [vmem:[%s529_s3] sm:$0xff] %v285_v14 }
  0x26 PF: > { %s14_s14 = sadd.s32 1, %s456_s14   ;;  %s530_s12 = smov %s452_s13 }
  0x27   : > { %p11_p7 = scmp.ge.s32.totalorder %s14_s14, 4   ;;  %s531_s13 = smov %s533_s15 }
  0x29   :  { %13 = sbr.rel (!%p11_p7) target bundleno = 2 (0x2), region = 81 }

</bundles_post_ra>
